<compile_context>
chip_gen: v7x
topology: tpu7x:2x2x1
jax: 0.10.0
libtpu: 0.0.40
codegen_flags: <defaults>
</compile_context>

<pallas_src>
import math

import jax
import jax.numpy as jnp
from jax import lax
from jax.experimental import pallas as pl
from jax.experimental.pallas import tpu as pltpu

HIDDEN = 64
NUM_HEADS = 4
HEAD_DIM = HIDDEN // NUM_HEADS


def critic_kernel(
    drone_ref, fire_ref,        # (block_b, Nd, 2), (block_b, Nf, 2)
    wq_ref, bq_ref,             # fused drone->q   (2, 64), (1, 64)   [scale folded in]
    wkv_ref, bkv_ref,           # fused fire->k|v  (2, 128), (1, 128)
    wvalh_ref,                  # block-diagonal per-head value weights (64, 4)
    bval_ref,                   # fused value bias (1, 1)
    out_ref,                    # (1, block_b, Nd)
):
    # TODO(synk): key_padding_mask (masks) path not implemented; Critic is exercised with masks=None.
    block_b, nd, _ = drone_ref.shape

    # Hoist weight loads out of the per-batch loop.
    wq = wq_ref[...]
    bq = bq_ref[...]
    wkv = wkv_ref[...]
    bkv = bkv_ref[...]
    wvalh = wvalh_ref[...]
    bval = bval_ref[...]

    for b in range(block_b):                       # static, unrolled
        d = drone_ref[b]                           # (Nd, 2)
        f = fire_ref[b]                            # (Nf, 2)

        # Fused projections (scale already folded into wq/bq).
        q = jnp.dot(d, wq, preferred_element_type=jnp.float32) + bq        # (Nd, 64)
        kv = jnp.dot(f, wkv, preferred_element_type=jnp.float32) + bkv     # (Nf, 128)
        v = kv[:, HIDDEN:]                                                  # (Nf, 64)
        # Per-head value reductions r_h = V_h @ Wval'_h, all heads in one matmul.
        r = jnp.dot(v, wvalh, preferred_element_type=jnp.float32)          # (Nf, 4)

        val_t = jnp.zeros((1, nd), jnp.float32) + bval                      # (1, Nd)
        for h in range(NUM_HEADS):
            lo = h * HEAD_DIM
            qh = q[:, lo:lo + HEAD_DIM]            # (Nd, 16)
            kh = kv[:, lo:lo + HEAD_DIM]           # (Nf, 16)
            # Transposed scores: keys along sublanes, queries along lanes. No explicit .T.
            s_t = lax.dot_general(kh, qh, (((1,), (1,)), ((), ())),
                                  preferred_element_type=jnp.float32)      # (Nf, Nd)
            m = jnp.max(s_t, axis=0, keepdims=True)                         # (1, Nd)
            p_t = jnp.exp(s_t - m)                                          # (Nf, Nd)
            l = jnp.sum(p_t, axis=0, keepdims=True)                         # (1, Nd)
            inv = pl.reciprocal(l, approx=True)                             # EUP slot
            rh = r[:, h:h + 1]                                              # (Nf, 1)
            contrib = jnp.sum(rh * p_t, axis=0, keepdims=True)              # (1, Nd)
            val_t = val_t + contrib * inv

        out_ref[0, pl.ds(b, 1), :] = val_t


def fuse_params(p):
    """One-time, host-side algebraic fusion of the PyTorch parameterization."""
    scale = 1.0 / math.sqrt(HEAD_DIM)
    wq_f = (p["wd"] @ p["wq"]) * scale                     # (2, 64)
    bq_f = (p["bd"] @ p["wq"] + p["bq"]) * scale           # (1, 64)
    wk_f = p["wf"] @ p["wk"]                               # (2, 64)
    bk_f = p["bf"] @ p["wk"] + p["bk"]                     # (1, 64)
    wv_f = p["wf"] @ p["wv"]                               # (2, 64)
    bv_f = p["bf"] @ p["wv"] + p["bv"]                     # (1, 64)
    wkv_f = jnp.concatenate([wk_f, wv_f], axis=1)          # (2, 128) lane-dense
    bkv_f = jnp.concatenate([bk_f, bv_f], axis=1)          # (1, 128)
    wval_f = p["wo"] @ p["wval"]                           # (64, 1)
    bval_f = p["bo"] @ p["wval"] + p["bval"]               # (1, 1)
    # Embed the per-head 16-long slices of wval_f block-diagonally into (64, 4) so all
    # four r_h = V_h @ Wval'_h reductions are a single matmul in the kernel.
    head_ids = jnp.arange(HIDDEN) // HEAD_DIM              # (64,)
    wvalh = jnp.where(head_ids[:, None] == jnp.arange(NUM_HEADS)[None, :],
                      wval_f, 0.0).astype(jnp.float32)     # (64, 4)
    return {"wq": wq_f, "bq": bq_f, "wkv": wkv_f, "bkv": bkv_f,
            "wvalh": wvalh, "bval": bval_f}


def critic_forward(drone_states, fire_states, fused, *, grid_b=None):
    """drone_states: (B, Nd, 2), fire_states: (B, Nf, 2), float32. Returns (B, Nd, 1)."""
    B, Nd, _ = drone_states.shape
    _, Nf, _ = fire_states.shape

    if grid_b is None:
        # Two parallel grid steps when possible so a dual-TC chip (v7x) splits the batch
        # across cores; otherwise fold the whole batch into one step (single-TC friendly).
        grid_b = 2 if (B > 1 and B % 2 == 0) else 1
    assert B % grid_b == 0
    block_b = B // grid_b

    def full_spec(shape):
        n = len(shape)
        return pl.BlockSpec(shape, lambda i, _n=n: (0,) * _n)

    weight_args = (fused["wq"], fused["bq"], fused["wkv"], fused["bkv"],
                   fused["wvalh"], fused["bval"])

    in_specs = [
        pl.BlockSpec((block_b, Nd, 2), lambda i: (i, 0, 0)),
        pl.BlockSpec((block_b, Nf, 2), lambda i: (i, 0, 0)),
    ] + [full_spec(w.shape) for w in weight_args]

    out = pl.pallas_call(
        critic_kernel,
        out_shape=jax.ShapeDtypeStruct((grid_b, block_b, Nd), jnp.float32),
        grid_spec=pltpu.PrefetchScalarGridSpec(
            num_scalar_prefetch=0,
            grid=(grid_b,),
            in_specs=in_specs,
            out_specs=pl.BlockSpec((1, block_b, Nd), lambda i: (i, 0, 0)),
        ),
        compiler_params=pltpu.CompilerParams(dimension_semantics=("parallel",)),
    )(drone_states, fire_states, *weight_args)

    # Match the PyTorch module's output shape (B, Nd, 1).
    return out.reshape(B, Nd)[..., None]


def init_params(key):
    """Deterministic synthetic params in PyTorch layout: weights (in, out), biases (1, out)."""
    ks = jax.random.split(key, 16)

    def lin(kw, kb, fan_in, fan_out):
        bound = 1.0 / math.sqrt(fan_in)
        w = jax.random.uniform(kw, (fan_in, fan_out), jnp.float32, -bound, bound)
        b = jax.random.uniform(kb, (1, fan_out), jnp.float32, -bound, bound)
        return w, b

    p = {}
    p["wd"], p["bd"] = lin(ks[0], ks[1], 2, HIDDEN)          # drone_embed
    p["wf"], p["bf"] = lin(ks[2], ks[3], 2, HIDDEN)          # fire_embed
    p["wq"], p["bq"] = lin(ks[4], ks[5], HIDDEN, HIDDEN)     # MHA in_proj (q)
    p["wk"], p["bk"] = lin(ks[6], ks[7], HIDDEN, HIDDEN)     # MHA in_proj (k)
    p["wv"], p["bv"] = lin(ks[8], ks[9], HIDDEN, HIDDEN)     # MHA in_proj (v)
    p["wo"], p["bo"] = lin(ks[10], ks[11], HIDDEN, HIDDEN)   # MHA out_proj
    p["wval"], p["bval"] = lin(ks[12], ks[13], HIDDEN, 1)    # value_head
    return p


def critic_reference(drone_states, fire_states, p):
    """Pure-JAX reference mirroring PyTorch nn.MultiheadAttention semantics (unfused)."""
    de = drone_states @ p["wd"] + p["bd"]
    fe = fire_states @ p["wf"] + p["bf"]
    q = de @ p["wq"] + p["bq"]
    k = fe @ p["wk"] + p["bk"]
    v = fe @ p["wv"] + p["bv"]
    B, Nd, _ = q.shape
    Nf = k.shape[1]
    qh = q.reshape(B, Nd, NUM_HEADS, HEAD_DIM).transpose(0, 2, 1, 3)
    kh = k.reshape(B, Nf, NUM_HEADS, HEAD_DIM).transpose(0, 2, 1, 3)
    vh = v.reshape(B, Nf, NUM_HEADS, HEAD_DIM).transpose(0, 2, 1, 3)
    s = jnp.einsum("bhqd,bhkd->bhqk", qh, kh) / math.sqrt(HEAD_DIM)
    pw = jax.nn.softmax(s, axis=-1)
    a = jnp.einsum("bhqk,bhkd->bhqd", pw, vh)
    a = a.transpose(0, 2, 1, 3).reshape(B, Nd, HIDDEN)
    o = a @ p["wo"] + p["bo"]
    return o @ p["wval"] + p["bval"]


if __name__ == "__main__":
    key = jax.random.PRNGKey(0)
    k_in, k_par = jax.random.split(key)
    k_drone, k_fire = jax.random.split(k_in)

    B, T, Nd, Nf = 2, 3, 4, 8
    # states come in as (B, T, N, 2); prepare_tensor takes the last timestep (glue in JAX)
    drone_states_4d = jax.random.normal(k_drone, (B, T, Nd, 2), jnp.float32)
    fire_states_4d = jax.random.normal(k_fire, (B, T, Nf, 2), jnp.float32)
    drone_states = drone_states_4d[:, -1, :, :]
    fire_states = fire_states_4d[:, -1, :, :]

    params = init_params(k_par)
    fused = fuse_params(params)   # one-time host-side parameter transform

    value = critic_forward(drone_states, fire_states, fused)
    value = jax.block_until_ready(value)

    ref = critic_reference(drone_states, fire_states, params)
    assert value.shape == (B, Nd, 1)
    # Tolerance accounts for the (reviewed) algebraic weight fusion re-association and
    # the approx=True softmax reciprocal; errors observed are well below this bound.
    assert jnp.allclose(value, ref, atol=1e-3, rtol=1e-3), "mismatch vs reference"

    print("KERNEL_OK")
</pallas_src>

<mosaic_0001>
module attributes {stable_mosaic.version = 11 : i64} {
  func.func @critic_kernel(%arg0: i32, %arg1: memref<1x4x2xf32, #tpu.memory_space<vmem>>, %arg2: memref<1x8x2xf32, #tpu.memory_space<vmem>>, %arg3: memref<2x64xf32, #tpu.memory_space<vmem>>, %arg4: memref<1x64xf32, #tpu.memory_space<vmem>>, %arg5: memref<2x128xf32, #tpu.memory_space<vmem>>, %arg6: memref<1x128xf32, #tpu.memory_space<vmem>>, %arg7: memref<64x4xf32, #tpu.memory_space<vmem>>, %arg8: memref<1x1xf32, #tpu.memory_space<vmem>>, %arg9: memref<1x1x4xf32, #tpu.memory_space<vmem>>) attributes {dimension_semantics = [#tpu.dimension_semantics<parallel>], iteration_bounds = array<i64: 2>, scalar_prefetch = 0 : i64, scratch_operands = 0 : i64, tpu.core_type = #tpu.core_type<tc>, window_params = [{transform_indices = @transform_0, window_bounds = array<i64: 1, 4, 2>}, {transform_indices = @transform_1, window_bounds = array<i64: 1, 8, 2>}, {pipeline_mode = #tpu.pipeline_mode<synchronous>, transform_indices = @transform_2, window_bounds = array<i64: 2, 64>}, {pipeline_mode = #tpu.pipeline_mode<synchronous>, transform_indices = @transform_3, window_bounds = array<i64: 1, 64>}, {pipeline_mode = #tpu.pipeline_mode<synchronous>, transform_indices = @transform_4, window_bounds = array<i64: 2, 128>}, {pipeline_mode = #tpu.pipeline_mode<synchronous>, transform_indices = @transform_5, window_bounds = array<i64: 1, 128>}, {pipeline_mode = #tpu.pipeline_mode<synchronous>, transform_indices = @transform_6, window_bounds = array<i64: 64, 4>}, {pipeline_mode = #tpu.pipeline_mode<synchronous>, transform_indices = @transform_7, window_bounds = array<i64: 1, 1>}, {transform_indices = @transform_8, window_bounds = array<i64: 1, 1, 4>}]} {
    %c0 = arith.constant 0 : index
    %c0_0 = arith.constant 0 : index
    %0 = vector.load %arg3[%c0, %c0_0] : memref<2x64xf32, #tpu.memory_space<vmem>>, vector<2x64xf32>
    %c0_1 = arith.constant 0 : index
    %c0_2 = arith.constant 0 : index
    %1 = vector.load %arg4[%c0_1, %c0_2] : memref<1x64xf32, #tpu.memory_space<vmem>>, vector<1x64xf32>
    %c0_3 = arith.constant 0 : index
    %c0_4 = arith.constant 0 : index
    %2 = vector.load %arg5[%c0_3, %c0_4] : memref<2x128xf32, #tpu.memory_space<vmem>>, vector<2x128xf32>
    %c0_5 = arith.constant 0 : index
    %c0_6 = arith.constant 0 : index
    %3 = vector.load %arg6[%c0_5, %c0_6] : memref<1x128xf32, #tpu.memory_space<vmem>>, vector<1x128xf32>
    %c0_7 = arith.constant 0 : index
    %c0_8 = arith.constant 0 : index
    %4 = vector.load %arg7[%c0_7, %c0_8] : memref<64x4xf32, #tpu.memory_space<vmem>>, vector<64x4xf32>
    %c0_9 = arith.constant 0 : index
    %c0_10 = arith.constant 0 : index
    %5 = vector.load %arg8[%c0_9, %c0_10] : memref<1x1xf32, #tpu.memory_space<vmem>>, vector<1x1xf32>
    %c0_11 = arith.constant 0 : index
    %c0_12 = arith.constant 0 : index
    %c0_13 = arith.constant 0 : index
    %6 = vector.load %arg1[%c0_11, %c0_12, %c0_13] : memref<1x4x2xf32, #tpu.memory_space<vmem>>, vector<1x4x2xf32>
    %7 = vector.shape_cast %6 : vector<1x4x2xf32> to vector<4x2xf32>
    %c0_14 = arith.constant 0 : index
    %c0_15 = arith.constant 0 : index
    %c0_16 = arith.constant 0 : index
    %8 = vector.load %arg2[%c0_14, %c0_15, %c0_16] : memref<1x8x2xf32, #tpu.memory_space<vmem>>, vector<1x8x2xf32>
    %9 = vector.shape_cast %8 : vector<1x8x2xf32> to vector<8x2xf32>
    %cst = arith.constant dense<0.000000e+00> : vector<4x64xf32>
    %10 = tpu.matmul %7, %0, %cst {dimension_numbers = #tpu.dot_dimension_numbers<[1], [0], [0], [1], [0, 0, 1, 1], [], []>} : vector<4x2xf32>, vector<2x64xf32>, vector<4x64xf32> -> vector<4x64xf32>
    %11 = vector.broadcast %1 : vector<1x64xf32> to vector<4x64xf32>
    %12 = arith.addf %10, %11 : vector<4x64xf32>
    %cst_17 = arith.constant dense<0.000000e+00> : vector<8x128xf32>
    %13 = tpu.matmul %9, %2, %cst_17 {dimension_numbers = #tpu.dot_dimension_numbers<[1], [0], [0], [1], [0, 0, 1, 1], [], []>} : vector<8x2xf32>, vector<2x128xf32>, vector<8x128xf32> -> vector<8x128xf32>
    %14 = vector.broadcast %3 : vector<1x128xf32> to vector<8x128xf32>
    %15 = arith.addf %13, %14 : vector<8x128xf32>
    %16 = vector.extract_strided_slice %15 {offsets = [0, 64], sizes = [8, 64], strides = [1, 1]} : vector<8x128xf32> to vector<8x64xf32>
    %cst_18 = arith.constant dense<0.000000e+00> : vector<8x4xf32>
    %17 = tpu.matmul %16, %4, %cst_18 {dimension_numbers = #tpu.dot_dimension_numbers<[1], [0], [0], [1], [0, 0, 1, 1], [], []>} : vector<8x64xf32>, vector<64x4xf32>, vector<8x4xf32> -> vector<8x4xf32>
    %cst_19 = arith.constant 0.000000e+00 : f32
    %18 = vector.broadcast %cst_19 : f32 to vector<1x4xf32>
    %19 = vector.broadcast %5 : vector<1x1xf32> to vector<1x4xf32>
    %20 = arith.addf %18, %19 : vector<1x4xf32>
    %21 = vector.extract_strided_slice %12 {offsets = [0, 0], sizes = [4, 16], strides = [1, 1]} : vector<4x64xf32> to vector<4x16xf32>
    %22 = vector.extract_strided_slice %15 {offsets = [0, 0], sizes = [8, 16], strides = [1, 1]} : vector<8x128xf32> to vector<8x16xf32>
    %cst_20 = arith.constant dense<0.000000e+00> : vector<8x4xf32>
    %23 = tpu.matmul %22, %21, %cst_20 {dimension_numbers = #tpu.dot_dimension_numbers<[1], [1], [0], [0], [0, 0, 1, 0], [], []>} : vector<8x16xf32>, vector<4x16xf32>, vector<8x4xf32> -> vector<8x4xf32>
    %cst_21 = arith.constant dense<0xFF800000> : vector<4xf32>
    %24 = vector.multi_reduction <maximumf>, %23, %cst_21 [0] : vector<8x4xf32> to vector<4xf32>
    %25 = vector.shape_cast %24 : vector<4xf32> to vector<1x4xf32>
    %26 = vector.broadcast %25 : vector<1x4xf32> to vector<8x4xf32>
    %27 = arith.subf %23, %26 : vector<8x4xf32>
    %28 = math.exp %27 : vector<8x4xf32>
    %cst_22 = arith.constant dense<0.000000e+00> : vector<4xf32>
    %29 = vector.multi_reduction <add>, %28, %cst_22 [0] : vector<8x4xf32> to vector<4xf32>
    %30 = vector.shape_cast %29 : vector<4xf32> to vector<1x4xf32>
    %31 = tpu.reciprocal %30 {approx = true} : vector<1x4xf32> -> vector<1x4xf32>
    %32 = vector.extract_strided_slice %17 {offsets = [0, 0], sizes = [8, 1], strides = [1, 1]} : vector<8x4xf32> to vector<8x1xf32>
    %33 = vector.broadcast %32 : vector<8x1xf32> to vector<8x4xf32>
    %34 = arith.mulf %33, %28 : vector<8x4xf32>
    %cst_23 = arith.constant dense<0.000000e+00> : vector<4xf32>
    %35 = vector.multi_reduction <add>, %34, %cst_23 [0] : vector<8x4xf32> to vector<4xf32>
    %36 = vector.shape_cast %35 : vector<4xf32> to vector<1x4xf32>
    %37 = arith.mulf %36, %31 : vector<1x4xf32>
    %38 = arith.addf %20, %37 : vector<1x4xf32>
    %39 = vector.extract_strided_slice %12 {offsets = [0, 16], sizes = [4, 16], strides = [1, 1]} : vector<4x64xf32> to vector<4x16xf32>
    %40 = vector.extract_strided_slice %15 {offsets = [0, 16], sizes = [8, 16], strides = [1, 1]} : vector<8x128xf32> to vector<8x16xf32>
    %cst_24 = arith.constant dense<0.000000e+00> : vector<8x4xf32>
    %41 = tpu.matmul %40, %39, %cst_24 {dimension_numbers = #tpu.dot_dimension_numbers<[1], [1], [0], [0], [0, 0, 1, 0], [], []>} : vector<8x16xf32>, vector<4x16xf32>, vector<8x4xf32> -> vector<8x4xf32>
    %cst_25 = arith.constant dense<0xFF800000> : vector<4xf32>
    %42 = vector.multi_reduction <maximumf>, %41, %cst_25 [0] : vector<8x4xf32> to vector<4xf32>
    %43 = vector.shape_cast %42 : vector<4xf32> to vector<1x4xf32>
    %44 = vector.broadcast %43 : vector<1x4xf32> to vector<8x4xf32>
    %45 = arith.subf %41, %44 : vector<8x4xf32>
    %46 = math.exp %45 : vector<8x4xf32>
    %cst_26 = arith.constant dense<0.000000e+00> : vector<4xf32>
    %47 = vector.multi_reduction <add>, %46, %cst_26 [0] : vector<8x4xf32> to vector<4xf32>
    %48 = vector.shape_cast %47 : vector<4xf32> to vector<1x4xf32>
    %49 = tpu.reciprocal %48 {approx = true} : vector<1x4xf32> -> vector<1x4xf32>
    %50 = vector.extract_strided_slice %17 {offsets = [0, 1], sizes = [8, 1], strides = [1, 1]} : vector<8x4xf32> to vector<8x1xf32>
    %51 = vector.broadcast %50 : vector<8x1xf32> to vector<8x4xf32>
    %52 = arith.mulf %51, %46 : vector<8x4xf32>
    %cst_27 = arith.constant dense<0.000000e+00> : vector<4xf32>
    %53 = vector.multi_reduction <add>, %52, %cst_27 [0] : vector<8x4xf32> to vector<4xf32>
    %54 = vector.shape_cast %53 : vector<4xf32> to vector<1x4xf32>
    %55 = arith.mulf %54, %49 : vector<1x4xf32>
    %56 = arith.addf %38, %55 : vector<1x4xf32>
    %57 = vector.extract_strided_slice %12 {offsets = [0, 32], sizes = [4, 16], strides = [1, 1]} : vector<4x64xf32> to vector<4x16xf32>
    %58 = vector.extract_strided_slice %15 {offsets = [0, 32], sizes = [8, 16], strides = [1, 1]} : vector<8x128xf32> to vector<8x16xf32>
    %cst_28 = arith.constant dense<0.000000e+00> : vector<8x4xf32>
    %59 = tpu.matmul %58, %57, %cst_28 {dimension_numbers = #tpu.dot_dimension_numbers<[1], [1], [0], [0], [0, 0, 1, 0], [], []>} : vector<8x16xf32>, vector<4x16xf32>, vector<8x4xf32> -> vector<8x4xf32>
    %cst_29 = arith.constant dense<0xFF800000> : vector<4xf32>
    %60 = vector.multi_reduction <maximumf>, %59, %cst_29 [0] : vector<8x4xf32> to vector<4xf32>
    %61 = vector.shape_cast %60 : vector<4xf32> to vector<1x4xf32>
    %62 = vector.broadcast %61 : vector<1x4xf32> to vector<8x4xf32>
    %63 = arith.subf %59, %62 : vector<8x4xf32>
    %64 = math.exp %63 : vector<8x4xf32>
    %cst_30 = arith.constant dense<0.000000e+00> : vector<4xf32>
    %65 = vector.multi_reduction <add>, %64, %cst_30 [0] : vector<8x4xf32> to vector<4xf32>
    %66 = vector.shape_cast %65 : vector<4xf32> to vector<1x4xf32>
    %67 = tpu.reciprocal %66 {approx = true} : vector<1x4xf32> -> vector<1x4xf32>
    %68 = vector.extract_strided_slice %17 {offsets = [0, 2], sizes = [8, 1], strides = [1, 1]} : vector<8x4xf32> to vector<8x1xf32>
    %69 = vector.broadcast %68 : vector<8x1xf32> to vector<8x4xf32>
    %70 = arith.mulf %69, %64 : vector<8x4xf32>
    %cst_31 = arith.constant dense<0.000000e+00> : vector<4xf32>
    %71 = vector.multi_reduction <add>, %70, %cst_31 [0] : vector<8x4xf32> to vector<4xf32>
    %72 = vector.shape_cast %71 : vector<4xf32> to vector<1x4xf32>
    %73 = arith.mulf %72, %67 : vector<1x4xf32>
    %74 = arith.addf %56, %73 : vector<1x4xf32>
    %75 = vector.extract_strided_slice %12 {offsets = [0, 48], sizes = [4, 16], strides = [1, 1]} : vector<4x64xf32> to vector<4x16xf32>
    %76 = vector.extract_strided_slice %15 {offsets = [0, 48], sizes = [8, 16], strides = [1, 1]} : vector<8x128xf32> to vector<8x16xf32>
    %cst_32 = arith.constant dense<0.000000e+00> : vector<8x4xf32>
    %77 = tpu.matmul %76, %75, %cst_32 {dimension_numbers = #tpu.dot_dimension_numbers<[1], [1], [0], [0], [0, 0, 1, 0], [], []>} : vector<8x16xf32>, vector<4x16xf32>, vector<8x4xf32> -> vector<8x4xf32>
    %cst_33 = arith.constant dense<0xFF800000> : vector<4xf32>
    %78 = vector.multi_reduction <maximumf>, %77, %cst_33 [0] : vector<8x4xf32> to vector<4xf32>
    %79 = vector.shape_cast %78 : vector<4xf32> to vector<1x4xf32>
    %80 = vector.broadcast %79 : vector<1x4xf32> to vector<8x4xf32>
    %81 = arith.subf %77, %80 : vector<8x4xf32>
    %82 = math.exp %81 : vector<8x4xf32>
    %cst_34 = arith.constant dense<0.000000e+00> : vector<4xf32>
    %83 = vector.multi_reduction <add>, %82, %cst_34 [0] : vector<8x4xf32> to vector<4xf32>
    %84 = vector.shape_cast %83 : vector<4xf32> to vector<1x4xf32>
    %85 = tpu.reciprocal %84 {approx = true} : vector<1x4xf32> -> vector<1x4xf32>
    %86 = vector.extract_strided_slice %17 {offsets = [0, 3], sizes = [8, 1], strides = [1, 1]} : vector<8x4xf32> to vector<8x1xf32>
    %87 = vector.broadcast %86 : vector<8x1xf32> to vector<8x4xf32>
    %88 = arith.mulf %87, %82 : vector<8x4xf32>
    %cst_35 = arith.constant dense<0.000000e+00> : vector<4xf32>
    %89 = vector.multi_reduction <add>, %88, %cst_35 [0] : vector<8x4xf32> to vector<4xf32>
    %90 = vector.shape_cast %89 : vector<4xf32> to vector<1x4xf32>
    %91 = arith.mulf %90, %85 : vector<1x4xf32>
    %92 = arith.addf %74, %91 : vector<1x4xf32>
    %c0_36 = arith.constant 0 : index
    %c0_37 = arith.constant 0 : index
    %c0_38 = arith.constant 0 : index
    %93 = vector.load %arg9[%c0_36, %c0_37, %c0_38] : memref<1x1x4xf32, #tpu.memory_space<vmem>>, vector<1x1x4xf32>
    %94 = vector.shape_cast %93 : vector<1x1x4xf32> to vector<1x4xf32>
    %95 = vector.shape_cast %92 : vector<1x4xf32> to vector<1x1x4xf32>
    tpu.vector_store %arg9[%c0_36, %c0_37, %c0_38], %95 {strides = array<i32>} : memref<1x1x4xf32, #tpu.memory_space<vmem>>, vector<1x1x4xf32>,
    return
  }
  func.func @transform_0(%arg0: i32) -> (i32, i32, i32) {
    %c0_i32 = arith.constant 0 : i32
    %c0_i32_0 = arith.constant 0 : i32
    %c0_i32_1 = arith.constant 0 : i32
    return %arg0, %c0_i32, %c0_i32_0 : i32, i32, i32
  }
  func.func @transform_1(%arg0: i32) -> (i32, i32, i32) {
    %c0_i32 = arith.constant 0 : i32
    %c0_i32_0 = arith.constant 0 : i32
    %c0_i32_1 = arith.constant 0 : i32
    return %arg0, %c0_i32, %c0_i32_0 : i32, i32, i32
  }
  func.func @transform_2(%arg0: i32) -> (i32, i32) {
    %c0_i32 = arith.constant 0 : i32
    %c0_i32_0 = arith.constant 0 : i32
    %c0_i32_1 = arith.constant 0 : i32
    return %c0_i32, %c0_i32_0 : i32, i32
  }
  func.func @transform_3(%arg0: i32) -> (i32, i32) {
    %c0_i32 = arith.constant 0 : i32
    %c0_i32_0 = arith.constant 0 : i32
    %c0_i32_1 = arith.constant 0 : i32
    return %c0_i32, %c0_i32_0 : i32, i32
  }
  func.func @transform_4(%arg0: i32) -> (i32, i32) {
    %c0_i32 = arith.constant 0 : i32
    %c0_i32_0 = arith.constant 0 : i32
    %c0_i32_1 = arith.constant 0 : i32
    return %c0_i32, %c0_i32_0 : i32, i32
  }
  func.func @transform_5(%arg0: i32) -> (i32, i32) {
    %c0_i32 = arith.constant 0 : i32
    %c0_i32_0 = arith.constant 0 : i32
    %c0_i32_1 = arith.constant 0 : i32
    return %c0_i32, %c0_i32_0 : i32, i32
  }
  func.func @transform_6(%arg0: i32) -> (i32, i32) {
    %c0_i32 = arith.constant 0 : i32
    %c0_i32_0 = arith.constant 0 : i32
    %c0_i32_1 = arith.constant 0 : i32
    return %c0_i32, %c0_i32_0 : i32, i32
  }
  func.func @transform_7(%arg0: i32) -> (i32, i32) {
    %c0_i32 = arith.constant 0 : i32
    %c0_i32_0 = arith.constant 0 : i32
    %c0_i32_1 = arith.constant 0 : i32
    return %c0_i32, %c0_i32_0 : i32, i32
  }
  func.func @transform_8(%arg0: i32) -> (i32, i32, i32) {
    %c0_i32 = arith.constant 0 : i32
    %c0_i32_0 = arith.constant 0 : i32
    %c0_i32_1 = arith.constant 0 : i32
    return %arg0, %c0_i32, %c0_i32_0 : i32, i32, i32
  }
}

</mosaic_0001>

<bundles_post_ra>
// kernel: tpu_custom_call.1
= control target key start
LH: loop header
LB: loop body
LE: loop exit
PB: predicated region body
PF: predicated region fallthrough
CT: control target
= control target key end

     0   :  { %s1589_s0 = inlined_call_operand.vmem [shape: f32[2,4,2], index: 0, kind: input, shape index: {}]   ;;  %s1590_s1 = inlined_call_operand.vmem [shape: f32[2,8,2], index: 1, kind: input, shape index: {}]   ;;  %s1591_s2 = inlined_call_operand.vmem [shape: f32[2,64], index: 2, kind: input, shape index: {}]   ;;  %s1592_s3 = inlined_call_operand.vmem [shape: f32[1,64], index: 3, kind: input, shape index: {}]   ;;  %s1593_s4 = inlined_call_operand.vmem [shape: f32[2,128], index: 4, kind: input, shape index: {}]   ;;  %s1594_s5 = inlined_call_operand.vmem [shape: f32[1,128], index: 5, kind: input, shape index: {}]   ;;  %s1595_s6 = inlined_call_operand.vmem [shape: f32[64,4], index: 6, kind: input, shape index: {}]   ;;  %s1596_s7 = inlined_call_operand.<no memory space> [shape: f32[1,1], index: 7, kind: input, shape index: {}]   ;;  %s1597_s8 = inlined_call_operand.hbm [shape: f32[2,1,4], index: 8, kind: output, shape index: {}]  }
   0x1   :  { %v13_v0 = vstv %s1596_s7 }
   0x2   :  { %14 = vst [vmem:[#allocation2] sm:$0x1] %v13_v0 }
   0x3   :  { %15 = vsyncpa [#allocation4], 0 }
   0x4   :  { %17 = vsyncpa [#allocation4 + $0x1], 0  ;;  %s1410_s29 = smov 0   ;;  %s1412_s30 = smov 0  }
   0x5   :  { %s1414_s9 = smov 0   ;;  %s1416_s10 = smov 0  }
   0x6 LB: > { %s1431_s7 = sadd.s32 4294967295, %s1348_s10   ;;  %s1108_s11 = sadd.s32 4294967294, %s1348_s10   ;;  %s1348_s10 = sphi %s1416_s10, %s1603_s10   ;;  %s1344_s9 = sphi %s1414_s9, %s1602_s9   ;;  %s1340_s30 = sphi %s1412_s30, %s1601_s30   ;;  %s1336_s29 = sphi %s1410_s29, %s1600_s29  }
   0x7   : > { %s1435_s12 = sadd.s32 1, %s1348_s10   ;;  %s208_s13 = sadd.s32 1, %s1344_s9 }
   0x8   : > { %s205_s14 = ssub.s32 %s1348_s10, %s1435_s12  ;;  %p218_p0 = scmp.ne.s32.totalorder %s1344_s9, %s1340_s30 }
   0x9   : > { %p206_p1 = scmp.eq.s32.totalorder %s205_s14, 0  ;;  %p219_p2 = scmp.eq.s32.totalorder %s1431_s7, 1 }
   0xa   : > { %p224_p3 = scmp.ne.s32.totalorder %s1340_s30, %s1336_s29  ;;  %p225_p4 = scmp.eq.s32.totalorder %s1108_s11, 1 }
   0xb   : > { %s1446_s15 = scalar_select %p206_p1, %s1344_s9, %s208_s13  }
   0xc   : > { %p1448_p5 = por %p219_p2, %p218_p0  ;;  %p1452_p6 = por %p225_p4, %p224_p3 }
   0xd   : > { %p1111_p7 = scmp.ge.s32.totalorder %s1348_s10, 1  ;;  %p275_p8 = scmp.lt.s32.totalorder %s1348_s10, 3 }
   0xf   : > { %p276_p9 = pnand %p1111_p7, %p275_p8 }
  0x10   : > { %v319_v1 = vld [vmem:[%s1591_s2] sm:$0x3] (!%p276_p9)  ;;  %vm344_vm0 = vcmask (!%p276_p9), 1041408   ;;  %p311_p10 = scmp.lt.s32.totalorder (!%p276_p9), %s1431_s7, 1  ;;  %v1350_v2 = vmov (!%p276_p9), 0.0   ;;  %vm1351_vm1 = vmmov (!%p276_p9), 0  }
  0x11   : > { %279 = sbr.rel (%p276_p9) target bundleno = 742 (0x2e6), region = 52  ;;  %1153 = vmatprep.subr.mxu0 (!%p276_p9), %v1350_v2  ;;  %1158 = vmatprep.subr.mxu1 (!%p276_p9), %v1350_v2  ;;  %v321_v3 = vld [vmem:[%s1593_s4] sm:$0x3] (!%p276_p9)  ;;  %vm340_vm2 = vcmask (!%p276_p9), 15360   ;;  %v324_v7 = vld [vmem:[%s1595_s6 + $0x8] sm:$0xff] (!%p276_p9)  ;;  %v325_v8 = vld [vmem:[%s1595_s6 + $0x10] sm:$0xff] (!%p276_p9) }
  0x12   : > { %1154 = vmatpush3.msk.msra.mxu0 (!%p276_p9), %vm344_vm0, %v319_v1  ;;  %1155 = vmatprep.mubr.msk.f32.mxu0 (!%p276_p9), %vm1351_vm1, %v1350_v2  ;;  %v323_v6 = vld [vmem:[%s1595_s6] sm:$0xff] (!%p276_p9)  ;;  %v1352_v9 = vmov (!%p276_p9), 0.0|0.0   ;;  %v326_v11 = vld [vmem:[%s1595_s6 + $0x18] sm:$0xff] (!%p276_p9)  ;;  %v328_v14 = vld [vmem:[%s1595_s6 + $0x28] sm:$0xff] (!%p276_p9)  ;;  %vm586_vm3 = vcmask (!%p276_p9), 130048   ;;  %s1355_s25 = smov (!%p276_p9), 96  }
  0x13   : > { %1159 = vmatpush3.msk.msra.mxu1 (!%p276_p9), %vm344_vm0, %v321_v3  ;;  %1160 = vmatprep.mubr.msk.f32.mxu1 (!%p276_p9), %vm1351_vm1, %v1350_v2  ;;  %v1203_v10 = vpack.c.bf16 (!%p276_p9), %v324_v7, %v323_v6  ;;  %v1206_v12 = vpack.c.bf16 (!%p276_p9), %v326_v11, %v325_v8  ;;  %v327_v13 = vld [vmem:[%s1595_s6 + $0x20] sm:$0xff] (!%p276_p9)  ;;  %v329_v16 = vld [vmem:[%s1595_s6 + $0x30] sm:$0xff] (!%p276_p9)  ;;  %v330_v17 = vld [vmem:[%s1595_s6 + $0x38] sm:$0xff] (!%p276_p9)  ;;  %s1356_s26 = smov (!%p276_p9), 80   ;;  %vm503_vm4 = vcmask (!%p276_p9), 523264   ;;  %v1357_v33 = vmov (!%p276_p9), 1  }
  0x14   : > { %1182 = vmatprep.subr.mxu1 (!%p276_p9), %v1350_v2  ;;  %1202 = vmatprep.subr.bf16.mxu0 (!%p276_p9), %v1352_v9  ;;  %v1209_v15 = vpack.c.bf16 (!%p276_p9), %v328_v14, %v327_v13  ;;  %v1212_v18 = vpack.c.bf16 (!%p276_p9), %v330_v17, %v329_v16  ;;  %v1114_v19 = vld [vmem:[%s1592_s3] ss:$0 sm:$0xff] (!%p276_p9)  ;;  %v1358_v34 = vmov (!%p276_p9), 0   ;;  %v1359_v41 = vmov (!%p276_p9), 2   ;;  %s1129_s28 = sshll.u32 (!%p276_p9), %s1431_s7, 4 }
  0x15   : > { %v1117_v20 = vld [vmem:[%s1594_s5] ss:$0 sm:$0xff] (!%p276_p9)  ;;  %1265 = vset.pattern.permute.xlu0 (!%p276_p9), %v1357_v33  ;;  %1264 = vset.pattern.permute.xlu1 (!%p276_p9), %v1358_v34  ;;  %v1360_v44 = vmov (!%p276_p9), 3   ;;  %vm662_vm5 = vcmask (!%p276_p9), 31744   ;;  %vm1026_vm6 = vcmask (!%p276_p9), 24576   ;;  %s1547_s19 = scalar_lea.hbm (!%p276_p9), %s1597_s8, %s1129_s28 }
  0x16   : > { %v331_v40 = vld [vmem:[#allocation2] sm:$0x1] (!%p276_p9) }
  0x18   : > { %s312_s22 = scalar_select %p311_p10, %s1431_s7, 1 }
  0x19   : > { %s1361_s7 = smov [#allocation3]  }
  0x1a   : > { %s1112_s23 = sshll.u32 %s312_s22, 2  ;;  %s1113_s24 = sshll.u32 %s312_s22, 3 }
  0x1b   : > { %s314_s27 = scalar_lea.vmem %s1589_s0, %s1112_s23  ;;  %s318_s13 = scalar_lea.vmem %s1590_s1, %s1113_s24 }
  0x1c   : > { %v332_v4 = vld [vmem:[%s314_s27] sm:$0xf]  ;;  %s1353_s23 = smov 112   ;;  %s1354_s24 = smov 64  }
  0x1d   : > { %v333_v5 = vld [vmem:[%s318_s13] sm:$0xff]  ;;  %1156 = vmatmul.mubr.msk.f32.vlgmr.msra.gmra.mrb[0].mxu0 %vm340_vm2, %v332_v4  ;;  %s309_s27 = sand.u32 1, %s1340_s30   ;;  %s1290_s22 = sshll.u32 %s1361_s7, 4  ;;  %s1291_s22 = int_to_ptr.vmem [resolvable:$false] %s1290_s22 }
  0x1e   : > { %1161 = vmatmul.mubr.msk.f32.vlgmr.msra.gmra.mrb[0].mxu1 %vm340_vm2, %v333_v5  ;;  %1179 = vmatprep.mubr.msk.f32.mxu0 %vm1351_vm1, %v1350_v2  ;;  %s310_s11 = scalar_lea.vmem [#allocation3], %s309_s27  ;;  %s1029_s20 = scalar_lea.sflag [#allocation4], %s309_s27 }
  0x1f   : > { %1184 = vmatprep.mubr.msk.f32.mxu1 %vm1351_vm1, %v1350_v2  ;;  %1204 = vmatpush3.bf16.msra.mxu0 %v1203_v10  ;;  %s1041_s13 = sshll.u32 %s310_s11, 4  ;;  %s1549_s13 = int_to_ptr.vmem [resolvable:$true] %s1041_s13 }
  0x20   : > { %1205 = vmatprep.subr.bf16.mxu0 %v1352_v9  ;;  %s1286_s21 = scalar_lea.vmem %s1549_s13, 16  ;;  %p1293_p0 = scmp.lt.s32.totalorder %s1549_s13, %s1291_s22 }
  0x21   : > { %p1287_p11 = scmp.ne.s32.totalorder %s1549_s13, %s1286_s21 }
  0x23   : > { %1207 = vmatpush3.bf16.msra.mxu0 %v1206_v12  ;;  %p1288_p12 = pnand %p1287_p11, %p1448_p5 }
  0x24   : > { %1208 = vmatprep.subr.bf16.mxu0 %v1352_v9 }
  0x25   : > { %p1289_p13 = pneg %p1288_p12 }
  0x27   : > { %1210 = vmatpush3.bf16.msra.mxu0 %v1209_v15 }
  0x28   : > { %1211 = vmatprep.subr.bf16.mxu0 %v1352_v9 }
  0x2b   : > { %1213 = vmatpush3.bf16.msra.mxu0 %v1212_v18 }
  0xf0   : > { %v414_v21 = vpop.f32.mrb[0].mxu0 }
  0xf1   : > { %v496_v22 = vpop.f32.mrb[0].mxu1  ;;  %v415_v23 = vadd.f32 %v1114_v19, %v414_v21  ;;  %v1157_v26 = vpop.f32.mrb[1].mxu0 }
  0xf2   : > { %v497_v24 = vadd.f32 %v1117_v20, %v496_v22  ;;  %v1162_v25 = vpop.f32.mrb[1].mxu1 }
  0xf3   : > { %1183 = vmatpush3.xpose.msk.msra.mxu1 %vm586_vm3, %v415_v23 }
  0xf4   : > { %696 = vrot.lane.b32.xlu1 %v497_v24, %s1353_s23  ;;  %501 = vrot.lane.b32.xlu0 %v497_v24, %s1354_s24 }
  0xf5   : > { %1187 = vmatprep.subr.mxu1 %v1350_v2 }
  0xf6   : > { %1185 = vmatmul.mubr.msk.f32.vlgmr.msra.gmra.mrb[2].mxu1 %vm586_vm3, %v497_v24 }
  0xf7   : > { %1189 = vmatprep.mubr.msk.f32.mxu1 %vm1351_vm1, %v1350_v2 }
  0xf8   : > { %698 = vrot.lane.b32.xlu0 %v415_v23, %s1353_s23  ;;  %808 = vrot.lane.b32.xlu1 %v415_v23, %s1355_s25  ;;  %s1292_s23 = scalar_lea.vmem %s1291_s22, 32 }
  0xf9   : > { %p1294_p1 = scmp.lt.s32.totalorder %s1292_s23, %s1286_s21 }
  0xfb   : > { %p1295_p2 = por %p1294_p1, %p1293_p0 }
  0xfc   : > { %806 = vrot.lane.b32.xlu0 %v497_v24, %s1355_s25  ;;  %918 = vrot.lane.b32.xlu1 %v415_v23, %s1356_s26 }
  0xfd   : > { %p1296_p3 = pnand %p1295_p2, %p1289_p13 }
 0x100   : > { %916 = vrot.lane.b32.xlu0 %v497_v24, %s1356_s26 }
 0x166   : > { %v502_v27 = vpop.permute.xlu0 %501  ;;  %v697_v28 = vpop.permute.xlu1 %696 }
 0x167   : > { %1180 = vmatmul.mubr.msk.f32.vlgmr.msra.gmra.mrb[2].mxu0 %vm503_vm4, %v502_v27 }
 0x16a   : > { %v699_v29 = vpop.permute.xlu0 %698  ;;  %v809_v30 = vpop.permute.xlu1 %808 }
 0x16b   : > { %1188 = vmatpush3.xpose.msk.msra.mxu1 %vm586_vm3, %v699_v29 }
 0x16c   : > { %1192 = vmatprep.subr.mxu1 %v1350_v2 }
 0x16e   : > { %1190 = vmatmul.mubr.msk.f32.vlgmr.msra.gmra.mrb[4].mxu1 %vm586_vm3, %v697_v28  ;;  %v807_v31 = vpop.permute.xlu0 %806  ;;  %v919_v32 = vpop.permute.xlu1 %918 }
 0x16f   : > { %1193 = vmatpush3.xpose.msk.msra.mxu1 %vm586_vm3, %v809_v30  ;;  %1194 = vmatprep.mubr.msk.f32.mxu1 %vm1351_vm1, %v1350_v2 }
 0x170   : > { %1197 = vmatprep.subr.mxu1 %v1350_v2 }
 0x172   : > { %1195 = vmatmul.mubr.msk.f32.vlgmr.msra.gmra.mrb[6].mxu1 %vm586_vm3, %v807_v31  ;;  %v917_v35 = vpop.permute.xlu0 %916 }
 0x173   : > { %1198 = vmatpush3.xpose.msk.msra.mxu1 %vm586_vm3, %v919_v32  ;;  %1199 = vmatprep.mubr.msk.f32.mxu1 %vm1351_vm1, %v1350_v2 }
 0x176   : > { %1200 = vmatmul.mubr.msk.f32.vlgmr.msra.gmra.mrb[8].mxu1 %vm586_vm3, %v917_v35 }
 0x1c9   : > { %v658_v36 = vpop.f32.mrb[2].mxu1 }
 0x1ca   : > { %v1186_v37 = vpop.f32.mrb[3].mxu1  ;;  %v663_v49 = vsel %vm662_vm5, %v658_v36, -inf }
 0x1cb   : > { %v664_v51 = vrot.slane %v663_v49, 4 }
 0x1cd   : > { %v665_v54 = vmax.f32 %v663_v49, %v664_v51 }
 0x1cf   : > { %v666_v58 = vrot.slane %v665_v54, 2 }
 0x1d1   : > { %v667_v62 = vmax.f32 %v665_v54, %v666_v58 }
 0x1d3   : > { %v668_v2 = vrot.slane %v667_v62, 1 }
 0x1d5   : > { %v669_v6 = vmax.f32 %v667_v62, %v668_v2 }
 0x1d7   : > { %v670_v10 = vsub.f32 %v658_v36, %v669_v6 }
 0x1d9   : > { %v671_v14 = vmul.f32 1.442695, %v670_v10 }
 0x1db   : > { %1270 = vpow2.f32 %v671_v14 }
 0x1e5   : > { %v1271_v21 = vpop.eup %1270 }
 0x1e6   : > { %v673_v23 = vsel %vm662_vm5, %v1271_v21, 0.0 }
 0x1e7   : > { %v674_v26 = vrot.slane %v673_v23, 4 }
 0x1e9   : > { %v675_v30 = vadd.f32 %v674_v26, %v673_v23 }
 0x23a   : > { %v572_v38 = vpop.f32.mrb[2].mxu0 }
 0x23b   : > { %793 = vperm.xlu0 %1265, %v572_v38   ;;  %683 = vperm.xlu1 %1264, %v572_v38   ;;  %v1181_v39 = vpop.f32.mrb[3].mxu0 }
 0x23f   : > { %1266 = vset.pattern.permute.xlu1 %v1359_v41  ;;  %1268 = vset.pattern.permute.xlu0 %v1358_v34  ;;  %v676_v34 = vrot.slane %v675_v30, 2 }
 0x240   : > { %903 = vperm.xlu1 %1266, %v572_v38   ;;  %578 = vperm.xlu0 %1268, %v331_v40  }
 0x241   : > { %v770_v42 = vpop.f32.mrb[4].mxu1 }
 0x242   : > { %v1191_v43 = vpop.f32.mrb[5].mxu1  ;;  %v774_v50 = vsel %vm662_vm5, %v770_v42, -inf }
 0x243   : > { %v775_v52 = vrot.slane %v774_v50, 4 }
 0x244   : > { %1267 = vset.pattern.permute.xlu1 %v1360_v44  ;;  %1269 = vset.pattern.permute.xlu0 %v1360_v44 }
 0x245   : > { %v880_v45 = vpop.f32.mrb[6].mxu1  ;;  %1013 = vperm.xlu1 %1267, %v572_v38   ;;  %v776_v56 = vmax.f32 %v774_v50, %v775_v52  ;;  %v677_v38 = vadd.f32 %v676_v34, %v675_v30  ;;  %v581_v50 = vlaneseq }
 0x246   : > { %v1196_v46 = vpop.f32.mrb[7].mxu1  ;;  %v884_v53 = vsel %vm662_vm5, %v880_v45, -inf }
 0x247   : > { %v885_v55 = vrot.slane %v884_v53, 4  ;;  %v777_v60 = vrot.slane %v776_v56, 2 }
 0x249   : > { %v990_v47 = vpop.f32.mrb[8].mxu1  ;;  %v886_v59 = vmax.f32 %v884_v53, %v885_v55  ;;  %v778_v0 = vmax.f32 %v776_v56, %v777_v60  ;;  %v582_v60 = vshrl.u32 %v581_v50, 7 }
 0x24a   : > { %v1201_v48 = vpop.f32.mrb[9].mxu1  ;;  %v994_v57 = vsel %vm662_vm5, %v990_v47, -inf }
 0x24b   : > { %v995_v61 = vrot.slane %v994_v57, 4  ;;  %v887_v63 = vrot.slane %v886_v59, 2  ;;  %v779_v4 = vrot.slane %v778_v0, 1 }
 0x24d   : > { %v996_v1 = vmax.f32 %v994_v57, %v995_v61  ;;  %v888_v3 = vmax.f32 %v886_v59, %v887_v63  ;;  %v780_v8 = vmax.f32 %v778_v0, %v779_v4 }
 0x24f   : > { %v997_v5 = vrot.slane %v996_v1, 2  ;;  %v889_v7 = vrot.slane %v888_v3, 1  ;;  %v781_v12 = vsub.f32 %v770_v42, %v780_v8  ;;  %v678_v42 = vrot.slane %v677_v38, 1 }
 0x251   : > { %v998_v9 = vmax.f32 %v996_v1, %v997_v5  ;;  %v890_v11 = vmax.f32 %v888_v3, %v889_v7  ;;  %v782_v16 = vmul.f32 1.442695, %v781_v12  ;;  %v679_v51 = vadd.f32 %v678_v42, %v677_v38 }
 0x253   : > { %v999_v13 = vrot.slane %v998_v9, 1  ;;  %v891_v15 = vsub.f32 %v880_v45, %v890_v11  ;;  %1272 = vpow2.f32 %v782_v16 }
 0x255   : > { %v1000_v17 = vmax.f32 %v998_v9, %v999_v13  ;;  %v892_v18 = vmul.f32 1.442695, %v891_v15  ;;  %v583_v9 = vsub.s32 0, %v582_v60 }
 0x257   : > { %v1001_v19 = vsub.f32 %v990_v47, %v1000_v17  ;;  %1274 = vpow2.f32 %v892_v18 }
 0x259   : > { %v1002_v20 = vmul.f32 1.442695, %v1001_v19 }
 0x25b   : > { %1276 = vpow2.f32 %v1002_v20 }
 0x25c   : > { %1278 = vrcp.f32 %v679_v51 }
 0x25d   : > { %v1273_v22 = vpop.eup %1272 }
 0x25e   : > { %v784_v25 = vsel %vm662_vm5, %v1273_v22, 0.0 }
 0x25f   : > { %v785_v27 = vrot.slane %v784_v25, 4 }
 0x261   : > { %v1275_v24 = vpop.eup %1274  ;;  %v786_v32 = vadd.f32 %v785_v27, %v784_v25 }
 0x262   : > { %v894_v28 = vsel %vm662_vm5, %v1275_v24, 0.0 }
 0x263   : > { %v895_v31 = vrot.slane %v894_v28, 4  ;;  %v787_v36 = vrot.slane %v786_v32, 2 }
 0x265   : > { %v1277_v29 = vpop.eup %1276  ;;  %v896_v35 = vadd.f32 %v895_v31, %v894_v28  ;;  %v788_v40 = vadd.f32 %v787_v36, %v786_v32 }
 0x266   : > { %v1004_v33 = vsel %vm662_vm5, %v1277_v29, 0.0 }
 0x267   : > { %v1005_v37 = vrot.slane %v1004_v33, 4  ;;  %v897_v39 = vrot.slane %v896_v35, 2  ;;  %v789_v44 = vrot.slane %v788_v40, 1 }
 0x269   : > { %v1006_v41 = vadd.f32 %v1005_v37, %v1004_v33  ;;  %v898_v43 = vadd.f32 %v897_v39, %v896_v35  ;;  %v790_v56 = vadd.f32 %v789_v44, %v788_v40 }
 0x26b   : > { %v1007_v45 = vrot.slane %v1006_v41, 2  ;;  %v899_v52 = vrot.slane %v898_v43, 1  ;;  %1280 = vrcp.f32 %v790_v56 }
 0x26d   : > { %v1008_v53 = vadd.f32 %v1007_v45, %v1006_v41  ;;  %v900_v61 = vadd.f32 %v899_v52, %v898_v43 }
 0x26f   : > { %v1009_v1 = vrot.slane %v1008_v53, 1  ;;  %1282 = vrcp.f32 %v900_v61 }
 0x271   : > { %v1010_v10 = vadd.f32 %v1009_v1, %v1008_v53 }
 0x273   : > { %1284 = vrcp.f32 %v1010_v10 }
 0x2ba   : > { %v794_v46 = vpop.permute.xlu0 %793  ;;  %v684_v47 = vpop.permute.xlu1 %683 }
 0x2bb   : > { %v796_v48 = vmul.f32 %v1273_v22, %v794_v46  ;;  %v686_v49 = vmul.f32 %v1271_v21, %v684_v47  ;;  %v1279_v22 = vpop.eup %1278 }
 0x2bc   : > { %v1281_v26 = vpop.eup %1280 }
 0x2bd   : > { %v797_v54 = vsel %vm662_vm5, %v796_v48, 0.0  ;;  %v687_v55 = vsel %vm662_vm5, %v686_v49, 0.0  ;;  %v1283_v32 = vpop.eup %1282 }
 0x2be   : > { %v798_v57 = vrot.slane %v797_v54, 4  ;;  %v688_v58 = vrot.slane %v687_v55, 4  ;;  %v1285_v39 = vpop.eup %1284 }
 0x2bf   : > { %v904_v59 = vpop.permute.xlu1 %903  ;;  %v579_v13 = vpop.permute.xlu0 %578 }
 0x2c0   : > { %v799_v62 = vadd.f32 %v798_v57, %v797_v54  ;;  %v689_v63 = vadd.f32 %v688_v58, %v687_v55  ;;  %v906_v0 = vmul.f32 %v1275_v24, %v904_v59  ;;  %v584_v20 = vrot.slane %v579_v13, %v583_v9 }
 0x2c2   : > { %v800_v2 = vrot.slane %v799_v62, 2  ;;  %v690_v3 = vrot.slane %v689_v63, 2  ;;  %v907_v4 = vsel %vm662_vm5, %v906_v0, 0.0 }
 0x2c3   : > { %v908_v5 = vrot.slane %v907_v4, 4 }
 0x2c4   : > { %v801_v6 = vadd.f32 %v800_v2, %v799_v62  ;;  %v691_v7 = vadd.f32 %v690_v3, %v689_v63  ;;  %v1014_v8 = vpop.permute.xlu1 %1013 }
 0x2c5   : > { %v909_v11 = vadd.f32 %v908_v5, %v907_v4  ;;  %v1016_v12 = vmul.f32 %v1277_v29, %v1014_v8 }
 0x2c6   : > { %v802_v14 = vrot.slane %v801_v6, 1  ;;  %v692_v15 = vrot.slane %v691_v7, 1 }
 0x2c7   : > { %v910_v16 = vrot.slane %v909_v11, 2  ;;  %v1017_v17 = vsel %vm662_vm5, %v1016_v12, 0.0 }
 0x2c8   : > { %v803_v18 = vadd.f32 %v802_v14, %v801_v6  ;;  %v1018_v19 = vrot.slane %v1017_v17, 4  ;;  %v693_v21 = vadd.f32 %v692_v15, %v691_v7 }
 0x2c9   : > { %v911_v23 = vadd.f32 %v910_v16, %v909_v11 }
 0x2ca   : > { %v1019_v24 = vadd.f32 %v1018_v19, %v1017_v17  ;;  %v694_v25 = vmul.f32 %v1279_v22, %v693_v21  ;;  %v804_v29 = vmul.f32 %v1281_v26, %v803_v18 }
 0x2cb   : > { %v912_v27 = vrot.slane %v911_v23, 1 }
 0x2cc   : > { %v1020_v28 = vrot.slane %v1019_v24, 2  ;;  %v695_v30 = vadd.f32 %v694_v25, %v584_v20 }
 0x2cd   : > { %v913_v31 = vadd.f32 %v912_v27, %v911_v23 }
 0x2ce   : > { %v1021_v33 = vadd.f32 %v1020_v28, %v1019_v24  ;;  %v805_v34 = vadd.f32 %v804_v29, %v695_v30 }
 0x2cf   : > { %v914_v35 = vmul.f32 %v1283_v32, %v913_v31 }
 0x2d0   : > { %v1022_v36 = vrot.slane %v1021_v33, 1 }
 0x2d1   : > { %v915_v37 = vadd.f32 %v914_v35, %v805_v34 }
 0x2d2   : > { %v1023_v38 = vadd.f32 %v1022_v36, %v1021_v33 }
 0x2d4   : > { %v1024_v40 = vmul.f32 %v1285_v39, %v1023_v38 }
 0x2d6   : > { %v1025_v41 = vadd.f32 %v1024_v40, %v915_v37 }
 0x2d8   : > { %1027 = vst.msk [vmem:[%s310_s11] sm:$0x1] %vm1026_vm6, %v1025_v41 }
 0x2d9   : > { %1299 = shalt.err (!%p1296_p3)
}
 0x2da   : > { %s1300_s24 = scalar_lea.hbm %s1547_s19, 16  ;;  %s1304_s27 = scalar_lea.hbm %s1597_s8, 32 }
 0x2db   : > { %p1301_p4 = scmp.ne.s32.totalorder %s1547_s19, %s1300_s24  ;;  %p1305_p9 = scmp.lt.u32.totalorder %s1547_s19, %s1597_s8 }
 0x2dc   : > { %p1306_p10 = scmp.lt.u32.totalorder %s1304_s27, %s1300_s24  ;;  %p1308_p12 = scmp.lt.u32.totalorder %s1300_s24, %s1547_s19 }
 0x2dd   : > { %p1302_p7 = pnand %p1301_p4, %p1448_p5 }
 0x2de   : > { %p1307_p11 = por %p1306_p10, %p1305_p9 }
 0x2df   : > { %p1303_p8 = pneg %p1302_p7 }
 0x2e0   : > { %p1309_p13 = por %p1308_p12, %p1307_p11 }
 0x2e2   : > { %p1310_p0 = pnand %p1309_p13, %p1303_p8 }
 0x2e4   : > { %1313 = shalt.err (!%p1310_p0)
}
 0x2e5   : > { %1214 = dma.vmem_to_hbm [thread:$0]  (%p1448_p5), %s1549_s13, 16, %s1547_s19, %s1029_s20  }
 0x2e6 PF: > { %p1220_p1 = scmp.ge.s32.totalorder %s1348_s10, 2  ;;  %s1053_s14 = sand.u32 1, %s1336_s29  }
 0x2e7   : > { %s1054_s18 = scalar_lea.sflag [#allocation4], %s1053_s14 }
 0x2e8   : > { %p1217_p2 = pnand %p1220_p1, %p1452_p6 }
 0x2ea   : > { %1331 = dma.done.wait (!%p1217_p2), %s1054_s18, 16  }
 0x2eb   : > { %1333 = vsyncadd (!%p1217_p2), %s1054_s18, 4294967280  ;;  %p20_p3 = scmp.ge.s32.totalorder %s1435_s12, 4   ;;  %s1600_s29 = smov %s1340_s30 }
 0x2ec   : > { %s1601_s30 = smov %s1344_s9  ;;  %s1602_s9 = smov %s1446_s15 }
 0x2ed   : > { %s1603_s10 = smov %s1435_s12  ;;  %22 = sbr.rel (!%p20_p3) target bundleno = 6 (0x6), region = 90 }
 0x2f4   :  { %1058 = vsyncpa [#allocation4], 1 }
 0x2f5   :  { %1060 = vsyncpa [#allocation4 + $0x1], 1 }

</bundles_post_ra>
